<compile_context>
chip_gen: v7x
topology: tpu7x:2x2x1
jax: 0.10.0
libtpu: 0.0.40
codegen_flags: <defaults>
</compile_context>

<pallas_src>
import functools

import jax
import jax.numpy as jnp
from jax import lax
from jax.experimental import pallas as pl
from jax.experimental.pallas import tpu as pltpu


def _deconv_leaky_kernel(w_ref, b_ref, p_ref, o_ref, *, slope):
    # w_ref: (Cout, KH*KW*Cin)      bf16   weight, loaded once, already 2D
    # b_ref: (Cout, 1)              f32    bias
    # p_ref: (1, KH*KW*Cin, HO*WO)  bf16   im2col patches for one batch elem
    # o_ref: (1, Cout, HO*WO)       f32    lane-dense output tile
    acc = jnp.dot(w_ref[...], p_ref[0],
                  preferred_element_type=jnp.float32)      # MXU, f32 acc
    acc = acc + b_ref[...]                                  # (Cout,1) bcast
    o_ref[0] = jnp.where(acc >= 0, acc, slope * acc).astype(o_ref.dtype)


def _tap_geometry(k, stride, padding, in_size, out_size):
    """Static geometry of one transposed-conv kernel tap.

    Output index `o` receives x[(o + padding - k)/stride] whenever the
    division is exact and in range.  Returns (o0, i0, n): first valid output
    index, matching first input index, and count; valid outputs step by
    `stride`, inputs step by 1.
    """
    r = (k - padding) % stride
    c = (r + padding - k) // stride            # exact integer by construction
    m0 = max(0, -c)
    m1 = min(in_size - c, -(-(out_size - r) // stride))
    n = max(0, m1 - m0)
    return r + m0 * stride, m0 + c, n


@functools.partial(
    jax.jit, static_argnames=("stride", "padding", "slope", "compute_dtype"))
def deconv_leaky_forward(x_nchw, w_t, bias, *, stride, padding, slope=0.2,
                         compute_dtype=jnp.bfloat16):
    """Forward pass of `deconv_leaky` (ConvTranspose2d + LeakyReLU).

    x_nchw: (N, Cin, H, W)
    w_t:    (Cin, Cout, KH, KW)   PyTorch ConvTranspose2d weight layout
    bias:   (Cout,)
    returns (N, Cout, HO, WO) with HO = (H-1)*stride - 2*padding + KH
    """
    N, Cin, H, W = x_nchw.shape
    Cin_w, Cout, KH, KW = w_t.shape
    assert Cin == Cin_w
    HO = (H - 1) * stride - 2 * padding + KH
    WO = (W - 1) * stride - 2 * padding + KW
    T = KH * KW * Cin            # contraction (im2col) dimension = 64
    L = HO * WO                  # lane dimension = 1024

    # ---- wrapper-side layout prep (plain JAX, all tiny, fused under jit) ---
    # patchesT[n, (kh*KW+kw)*Cin+ci, oh*WO+ow]
    #     = x[n, ci, (oh+padding-kh)/stride, (ow+padding-kw)/stride]  (else 0)
    # Built directly from the raw input; only non-zero taps are written.
    xc = x_nchw.astype(compute_dtype)
    patches = jnp.zeros((N, T, HO, WO), compute_dtype)
    for kh in range(KH):
        oh0, ih0, nh = _tap_geometry(kh, stride, padding, H, HO)
        for kw in range(KW):
            ow0, iw0, nw = _tap_geometry(kw, stride, padding, W, WO)
            if nh <= 0 or nw <= 0:
                continue
            t0 = (kh * KW + kw) * Cin
            patches = patches.at[
                :, t0:t0 + Cin,
                oh0:oh0 + nh * stride:stride,
                ow0:ow0 + nw * stride:stride,
            ].set(xc[:, :, ih0:ih0 + nh, iw0:iw0 + nw])
    patches_t = patches.reshape(N, T, L)

    # W2dT[co, (kh*KW+kw)*Cin+ci] = w_t[ci, co, kh, kw]   (cast once)
    w2d_t = jnp.transpose(w_t, (2, 3, 0, 1)).reshape(T, Cout).T
    w2d_t = w2d_t.astype(compute_dtype)
    b2 = bias.reshape(Cout, 1).astype(jnp.float32)

    kernel = functools.partial(_deconv_leaky_kernel, slope=slope)
    out = pl.pallas_call(
        kernel,
        out_shape=jax.ShapeDtypeStruct((N, Cout, L), jnp.float32),
        grid=(N,),
        in_specs=[
            pl.BlockSpec((Cout, T), lambda n: (0, 0)),        # weight (const)
            pl.BlockSpec((Cout, 1), lambda n: (0, 0)),        # bias   (const)
            pl.BlockSpec((1, T, L), lambda n: (n, 0, 0)),     # patches per n
        ],
        out_specs=pl.BlockSpec((1, Cout, L), lambda n: (n, 0, 0)),
        compiler_params=pltpu.CompilerParams(
            dimension_semantics=("parallel",)),
    )(w2d_t, b2, patches_t)

    # (N, Cout, HO*WO) -> (N, Cout, HO, WO): pure reshape, no transpose pass.
    return out.reshape(N, Cout, HO, WO).astype(x_nchw.dtype)


def _reference(x_nchw, w_t, bias, *, stride, padding, slope=0.2,
               operand_dtype=None):
    """Independent pure-JAX reference (lax.conv_general_dilated path)."""
    _, _, KH, KW = w_t.shape
    if operand_dtype is not None:
        x_nchw = x_nchw.astype(operand_dtype)
        w_t = w_t.astype(operand_dtype)
    x_nhwc = jnp.transpose(x_nchw, (0, 2, 3, 1))
    w_conv = jnp.transpose(jnp.flip(w_t, axis=(2, 3)), (2, 3, 0, 1))  # HWIO
    ph, pw = KH - 1 - padding, KW - 1 - padding
    y = lax.conv_general_dilated(
        x_nhwc, w_conv, window_strides=(1, 1),
        padding=[(ph, ph), (pw, pw)],
        lhs_dilation=(stride, stride),
        dimension_numbers=("NHWC", "HWIO", "NHWC"),
        preferred_element_type=jnp.float32)
    y = y + bias[None, None, None, :].astype(jnp.float32)
    y = jnp.where(y >= 0, y, slope * y)
    return jnp.transpose(y, (0, 3, 1, 2))


if __name__ == "__main__":
    # deconv_config = (in_channels=4, out_channels=8, kernel=4, stride=2, pad=1)
    IN_CH, OUT_CH, K, STRIDE, PAD = 4, 8, 4, 2, 1
    N, H, W = 2, 16, 16

    key = jax.random.PRNGKey(0)
    kx, kw_, kb = jax.random.split(key, 3)
    x = jax.random.normal(kx, (N, IN_CH, H, W), jnp.float32)
    # ConvTranspose2d weight shape: (in_channels, out_channels, KH, KW)
    w_t = 0.1 * jax.random.normal(kw_, (IN_CH, OUT_CH, K, K), jnp.float32)
    bias = 0.1 * jax.random.normal(kb, (OUT_CH,), jnp.float32)

    out = deconv_leaky_forward(x, w_t, bias, stride=STRIDE, padding=PAD)
    out = jax.block_until_ready(out)
    assert out.shape == (N, OUT_CH, 32, 32), out.shape

    # Strict check vs a reference using the same bf16 MXU-operand rounding
    # (both paths accumulate in f32).
    ref_bf16 = _reference(x, w_t, bias, stride=STRIDE, padding=PAD,
                          operand_dtype=jnp.bfloat16)
    err_b = float(jnp.max(jnp.abs(out - ref_bf16)))
    assert jnp.allclose(out, ref_bf16, atol=1e-3, rtol=1e-3), err_b

    # Sanity band vs the full-f32 reference (difference = bf16 operand
    # rounding only, as flagged in the review).
    ref_f32 = _reference(x, w_t, bias, stride=STRIDE, padding=PAD)
    err_f = float(jnp.max(jnp.abs(out - ref_f32)))
    assert jnp.allclose(out, ref_f32, atol=5e-2, rtol=5e-2), err_f

    print("KERNEL_OK")
</pallas_src>

<mosaic_0001>
module attributes {stable_mosaic.version = 11 : i64} {
  func.func @_deconv_leaky_kernel(%arg0: i32, %arg1: memref<8x64xbf16, #tpu.memory_space<vmem>>, %arg2: memref<8x1xf32, #tpu.memory_space<vmem>>, %arg3: memref<1x64x1024xbf16, #tpu.memory_space<vmem>>, %arg4: memref<1x8x1024xf32, #tpu.memory_space<vmem>>) attributes {dimension_semantics = [#tpu.dimension_semantics<parallel>], iteration_bounds = array<i64: 2>, scalar_prefetch = 0 : i64, scratch_operands = 0 : i64, tpu.core_type = #tpu.core_type<tc>, window_params = [{pipeline_mode = #tpu.pipeline_mode<synchronous>, transform_indices = @transform_0, window_bounds = array<i64: 8, 64>}, {pipeline_mode = #tpu.pipeline_mode<synchronous>, transform_indices = @transform_1, window_bounds = array<i64: 8, 1>}, {transform_indices = @transform_2, window_bounds = array<i64: 1, 64, 1024>}, {transform_indices = @transform_3, window_bounds = array<i64: 1, 8, 1024>}]} {
    %c0 = arith.constant 0 : index
    %c0_0 = arith.constant 0 : index
    %0 = vector.load %arg1[%c0, %c0_0] : memref<8x64xbf16, #tpu.memory_space<vmem>>, vector<8x64xbf16>
    %c0_1 = arith.constant 0 : index
    %c0_2 = arith.constant 0 : index
    %c0_3 = arith.constant 0 : index
    %1 = vector.load %arg3[%c0_1, %c0_2, %c0_3] : memref<1x64x1024xbf16, #tpu.memory_space<vmem>>, vector<1x64x1024xbf16>
    %2 = vector.shape_cast %1 : vector<1x64x1024xbf16> to vector<64x1024xbf16>
    %cst = arith.constant dense<0.000000e+00> : vector<8x1024xf32>
    %3 = tpu.matmul %0, %2, %cst {dimension_numbers = #tpu.dot_dimension_numbers<[1], [0], [0], [1], [0, 0, 1, 1], [], []>} : vector<8x64xbf16>, vector<64x1024xbf16>, vector<8x1024xf32> -> vector<8x1024xf32>
    %c0_4 = arith.constant 0 : index
    %c0_5 = arith.constant 0 : index
    %4 = vector.load %arg2[%c0_4, %c0_5] : memref<8x1xf32, #tpu.memory_space<vmem>>, vector<8x1xf32>
    %5 = vector.broadcast %4 : vector<8x1xf32> to vector<8x1024xf32>
    %6 = arith.addf %3, %5 : vector<8x1024xf32>
    %cst_6 = arith.constant 0.000000e+00 : f32
    %7 = vector.broadcast %cst_6 : f32 to vector<8x1024xf32>
    %8 = arith.cmpf oge, %6, %7 : vector<8x1024xf32>
    %cst_7 = arith.constant 2.000000e-01 : f32
    %9 = vector.broadcast %cst_7 : f32 to vector<8x1024xf32>
    %10 = arith.mulf %9, %6 : vector<8x1024xf32>
    %11 = arith.select %8, %6, %10 : vector<8x1024xi1>, vector<8x1024xf32>
    %c0_8 = arith.constant 0 : index
    %c0_9 = arith.constant 0 : index
    %c0_10 = arith.constant 0 : index
    %12 = vector.load %arg4[%c0_8, %c0_9, %c0_10] : memref<1x8x1024xf32, #tpu.memory_space<vmem>>, vector<1x8x1024xf32>
    %13 = vector.shape_cast %12 : vector<1x8x1024xf32> to vector<8x1024xf32>
    %14 = vector.shape_cast %11 : vector<8x1024xf32> to vector<1x8x1024xf32>
    tpu.vector_store %arg4[%c0_8, %c0_9, %c0_10], %14 {strides = array<i32>} : memref<1x8x1024xf32, #tpu.memory_space<vmem>>, vector<1x8x1024xf32>,
    return
  }
  func.func @transform_0(%arg0: i32) -> (i32, i32) {
    %c0_i32 = arith.constant 0 : i32
    %c0_i32_0 = arith.constant 0 : i32
    %c0_i32_1 = arith.constant 0 : i32
    return %c0_i32, %c0_i32_0 : i32, i32
  }
  func.func @transform_1(%arg0: i32) -> (i32, i32) {
    %c0_i32 = arith.constant 0 : i32
    %c0_i32_0 = arith.constant 0 : i32
    %c0_i32_1 = arith.constant 0 : i32
    return %c0_i32, %c0_i32_0 : i32, i32
  }
  func.func @transform_2(%arg0: i32) -> (i32, i32, i32) {
    %c0_i32 = arith.constant 0 : i32
    %c0_i32_0 = arith.constant 0 : i32
    %c0_i32_1 = arith.constant 0 : i32
    return %arg0, %c0_i32, %c0_i32_0 : i32, i32, i32
  }
  func.func @transform_3(%arg0: i32) -> (i32, i32, i32) {
    %c0_i32 = arith.constant 0 : i32
    %c0_i32_0 = arith.constant 0 : i32
    %c0_i32_1 = arith.constant 0 : i32
    return %arg0, %c0_i32, %c0_i32_0 : i32, i32, i32
  }
}

</mosaic_0001>

<bundles_post_ra>
// kernel: deconv_leaky_forward.1
= control target key start
LH: loop header
LB: loop body
LE: loop exit
PB: predicated region body
PF: predicated region fallthrough
CT: control target
= control target key end

     0   :  { %s714_s12 = smov 0   ;;  %s794_s0 = inlined_call_operand.vmem [shape: bf16[8,64], index: 0, kind: input, shape index: {}]   ;;  %s795_s1 = inlined_call_operand.vmem [shape: f32[8,1], index: 1, kind: input, shape index: {}]   ;;  %s796_s2 = inlined_call_operand.vmem [shape: bf16[2,64,1024], index: 2, kind: input, shape index: {}]   ;;  %s797_s3 = inlined_call_operand.vmem [shape: f32[2,8,1024], index: 3, kind: output, shape index: {}]  }
   0x1 LB: > { %s626_s13 = sadd.s32 4294967295, %s691_s12   ;;  %p630_p0 = scmp.ge.s32.totalorder %s691_s12, 1  ;;  %s691_s12 = sphi %s714_s12, %s13_s12  }
   0x2   : > { %p137_p1 = scmp.lt.s32.totalorder %s691_s12, 3 }
   0x4   : > { %p138_p2 = pnand %p630_p0, %p137_p1 }
   0x5   : > { %p161_p3 = scmp.lt.s32.totalorder (!%p138_p2), %s626_s13, 1  ;;  %v205_v0 = vld [vmem:[%s795_s1] sm:$0xff] (!%p138_p2)  ;;  %v693_v1 = vmov (!%p138_p2), 0   ;;  %vm371_vm0 = vcmask (!%p138_p2), 523264  }
   0x6   : > { %141 = sbr.rel (%p138_p2) target bundleno = 272 (0x110), region = 32  ;;  %407 = vmatprep.mubr.bf16.mxu0 (!%p138_p2), %v693_v1  ;;  %448 = vmatprep.mubr.bf16.mxu1 (!%p138_p2), %v693_v1  ;;  %v172_v44 = vld [vmem:[%s794_s0] sm:$0xf] (!%p138_p2) }
   0x7   : > { %684 = vset.pattern.permute.xlu0 (!%p138_p2), %v693_v1 }
   0x8   : > { %208 = vperm.xlu0 (!%p138_p2), %684, %v205_v0  }
   0xd   : > { %s799_s13 = smov (!%p161_p3, %s626_s13), 1 }
   0xe   : > { %s673_s16 = sshll.u32 %s799_s13, 8  ;;  %s674_s22 = sshll.u32 %s799_s13, 6 }
   0xf   : > { %s734_s19 = scalar_lea.vmem %s796_s2, %s673_s16  ;;  %s781_s25 = scalar_lea.vmem %s797_s3, %s674_s22 }
  0x10   : > { %v173_v2 = vld [vmem:[%s734_s19] sm:$0xff]  ;;  %v174_v4 = vld [vmem:[%s734_s19 + $0x8] sm:$0xff]  ;;  %v175_v32 = vld [vmem:[%s734_s19 + $0x10] sm:$0xff] }
  0x11   : > { %v177_v3 = vld [vmem:[%s734_s19 + $0x20] sm:$0xff]  ;;  %v178_v6 = vld [vmem:[%s734_s19 + $0x28] sm:$0xff]  ;;  %v179_v33 = vld [vmem:[%s734_s19 + $0x30] sm:$0xff] }
  0x12   : > { %v636_v5 = vcombine.high %v173_v2, %v177_v3  ;;  %v635_v7 = vcombine.low %v173_v2, %v177_v3  ;;  %v181_v8 = vld [vmem:[%s734_s19 + $0x40] sm:$0xff]  ;;  %v638_v10 = vcombine.high %v174_v4, %v178_v6  ;;  %v637_v11 = vcombine.low %v174_v4, %v178_v6  ;;  %v182_v13 = vld [vmem:[%s734_s19 + $0x48] sm:$0xff]  ;;  %v176_v34 = vld [vmem:[%s734_s19 + $0x18] sm:$0xff] }
  0x13   : > { %v185_v9 = vld [vmem:[%s734_s19 + $0x60] sm:$0xff]  ;;  %v186_v14 = vld [vmem:[%s734_s19 + $0x68] sm:$0xff]  ;;  %v180_v35 = vld [vmem:[%s734_s19 + $0x38] sm:$0xff]  ;;  %v640_v38 = vcombine.high %v175_v32, %v179_v33  ;;  %v639_v45 = vcombine.low %v175_v32, %v179_v33 }
  0x14   : > { %v644_v12 = vcombine.high %v181_v8, %v185_v9  ;;  %v189_v15 = vld [vmem:[%s734_s19 + $0x80] sm:$0xff]  ;;  %375 = vmatprep.subr.bf16.mxu0 %v636_v5  ;;  %v646_v16 = vcombine.high %v182_v13, %v186_v14  ;;  %v190_v18 = vld [vmem:[%s734_s19 + $0x88] sm:$0xff]  ;;  %416 = vmatprep.subr.bf16.mxu1 %v638_v10  ;;  %v643_v20 = vcombine.low %v181_v8, %v185_v9  ;;  %v183_v40 = vld [vmem:[%s734_s19 + $0x50] sm:$0xff] }
  0x15   : > { %v193_v17 = vld [vmem:[%s734_s19 + $0xa0] sm:$0xff]  ;;  %v194_v19 = vld [vmem:[%s734_s19 + $0xa8] sm:$0xff]  ;;  %376 = vmatpush1.bf16.msra.mxu0 %v635_v7  ;;  %417 = vmatpush1.bf16.msra.mxu1 %v637_v11  ;;  %v645_v21 = vcombine.low %v182_v13, %v186_v14  ;;  %v642_v39 = vcombine.high %v176_v34, %v180_v35  ;;  %v187_v41 = vld [vmem:[%s734_s19 + $0x70] sm:$0xff]  ;;  %v641_v46 = vcombine.low %v176_v34, %v180_v35 }
  0x16   : > { %377 = vmatprep.subr.bf16.mxu0 %v644_v12  ;;  %v652_v22 = vcombine.high %v189_v15, %v193_v17  ;;  %418 = vmatprep.subr.bf16.mxu1 %v646_v16  ;;  %v654_v23 = vcombine.high %v190_v18, %v194_v19  ;;  %v197_v24 = vld [vmem:[%s734_s19 + $0xc0] sm:$0xff]  ;;  %v198_v26 = vld [vmem:[%s734_s19 + $0xc8] sm:$0xff]  ;;  %v651_v28 = vcombine.low %v189_v15, %v193_v17  ;;  %v184_v42 = vld [vmem:[%s734_s19 + $0x58] sm:$0xff] }
  0x17   : > { %v201_v25 = vld [vmem:[%s734_s19 + $0xe0] sm:$0xff]  ;;  %v202_v27 = vld [vmem:[%s734_s19 + $0xe8] sm:$0xff]  ;;  %v653_v29 = vcombine.low %v190_v18, %v194_v19  ;;  %v188_v43 = vld [vmem:[%s734_s19 + $0x78] sm:$0xff]  ;;  %v648_v47 = vcombine.high %v183_v40, %v187_v41  ;;  %v647_v53 = vcombine.low %v183_v40, %v187_v41 }
  0x18   : > { %v660_v30 = vcombine.high %v197_v24, %v201_v25  ;;  %v662_v31 = vcombine.high %v198_v26, %v202_v27  ;;  %v659_v36 = vcombine.low %v197_v24, %v201_v25  ;;  %v661_v37 = vcombine.low %v198_v26, %v202_v27  ;;  %v191_v49 = vld [vmem:[%s734_s19 + $0x90] sm:$0xff]  ;;  %v192_v51 = vld [vmem:[%s734_s19 + $0x98] sm:$0xff] }
  0x19   : > { %378 = vmatpush1.bf16.msra.mxu0 %v643_v20  ;;  %419 = vmatpush1.bf16.msra.mxu1 %v645_v21  ;;  %v650_v48 = vcombine.high %v184_v42, %v188_v43  ;;  %v195_v50 = vld [vmem:[%s734_s19 + $0xb0] sm:$0xff]  ;;  %v196_v52 = vld [vmem:[%s734_s19 + $0xb8] sm:$0xff]  ;;  %v649_v54 = vcombine.low %v184_v42, %v188_v43 }
  0x1a   : > { %379 = vmatprep.subr.bf16.mxu0 %v652_v22  ;;  %420 = vmatprep.subr.bf16.mxu1 %v654_v23  ;;  %v656_v55 = vcombine.high %v191_v49, %v195_v50  ;;  %v658_v56 = vcombine.high %v192_v51, %v196_v52  ;;  %v199_v57 = vld [vmem:[%s734_s19 + $0xd0] sm:$0xff]  ;;  %v200_v59 = vld [vmem:[%s734_s19 + $0xd8] sm:$0xff]  ;;  %v655_v61 = vcombine.low %v191_v49, %v195_v50 }
  0x1b   : > { %v203_v58 = vld [vmem:[%s734_s19 + $0xf0] sm:$0xff]  ;;  %v204_v60 = vld [vmem:[%s734_s19 + $0xf8] sm:$0xff]  ;;  %v657_v62 = vcombine.low %v192_v51, %v196_v52 }
  0x1c   : > { %v664_v63 = vcombine.high %v199_v57, %v203_v58  ;;  %v666_v0 = vcombine.high %v200_v59, %v204_v60  ;;  %v663_v2 = vcombine.low %v199_v57, %v203_v58  ;;  %v665_v3 = vcombine.low %v200_v59, %v204_v60 }
  0x1d   : > { %380 = vmatpush1.bf16.msra.mxu0 %v651_v28  ;;  %421 = vmatpush1.bf16.msra.mxu1 %v653_v29 }
  0x1e   : > { %381 = vmatprep.subr.bf16.mxu0 %v660_v30  ;;  %422 = vmatprep.subr.bf16.mxu1 %v662_v31 }
  0x21   : > { %382 = vmatpush1.bf16.msra.mxu0 %v659_v36  ;;  %423 = vmatpush1.bf16.msra.mxu1 %v661_v37 }
  0x22   : > { %457 = vmatprep.subr.bf16.mxu0 %v640_v38  ;;  %498 = vmatprep.subr.bf16.mxu1 %v642_v39 }
  0x24   : > { %667 = vmatmul.mubr.msk.bf16.vlgmr.msra.gmra.mrb[0].mxu0 %vm371_vm0, %v172_v44  ;;  %668 = vmatmul.mubr.msk.bf16.vlgmr.msra.gmra.mrb[0].mxu1 %vm371_vm0, %v172_v44 }
  0x25   : > { %458 = vmatpush1.bf16.msra.mxu0 %v639_v45  ;;  %499 = vmatpush1.bf16.msra.mxu1 %v641_v46 }
  0x26   : > { %459 = vmatprep.subr.bf16.mxu0 %v648_v47  ;;  %500 = vmatprep.subr.bf16.mxu1 %v650_v48 }
  0x27   : > { %489 = vmatprep.mubr.bf16.mxu0 %v693_v1  ;;  %530 = vmatprep.mubr.bf16.mxu1 %v693_v1 }
  0x29   : > { %460 = vmatpush1.bf16.msra.mxu0 %v647_v53  ;;  %501 = vmatpush1.bf16.msra.mxu1 %v649_v54 }
  0x2a   : > { %461 = vmatprep.subr.bf16.mxu0 %v656_v55  ;;  %502 = vmatprep.subr.bf16.mxu1 %v658_v56 }
  0x2d   : > { %462 = vmatpush1.bf16.msra.mxu0 %v655_v61  ;;  %503 = vmatpush1.bf16.msra.mxu1 %v657_v62 }
  0x2e   : > { %463 = vmatprep.subr.bf16.mxu0 %v664_v63  ;;  %504 = vmatprep.subr.bf16.mxu1 %v666_v0 }
  0x31   : > { %464 = vmatpush1.bf16.msra.mxu0 %v663_v2  ;;  %505 = vmatpush1.bf16.msra.mxu1 %v665_v3 }
  0x34   : > { %669 = vmatmul.mubr.msk.bf16.vlgmr.msra.gmra.mrb[4].mxu0 %vm371_vm0, %v172_v44  ;;  %670 = vmatmul.mubr.msk.bf16.vlgmr.msra.gmra.mrb[4].mxu1 %vm371_vm0, %v172_v44 }
  0x87   : > { %v209_v1 = vpop.permute.xlu0 %208 }
  0xf7   : > { %v409_v4 = vpop.f32.mrb[0].mxu0  ;;  %v450_v6 = vpop.f32.mrb[0].mxu1 }
  0xf8   : > { %v410_v5 = vadd.f32 %v409_v4, %v209_v1  ;;  %v411_v7 = vpop.f32.mrb[1].mxu0  ;;  %v451_v8 = vadd.f32 %v450_v6, %v209_v1  ;;  %v452_v10 = vpop.f32.mrb[1].mxu1 }
  0xf9   : > { %v412_v9 = vadd.f32 %v411_v7, %v209_v1  ;;  %v413_v11 = vpop.f32.mrb[2].mxu0  ;;  %v453_v13 = vadd.f32 %v452_v10, %v209_v1  ;;  %v454_v14 = vpop.f32.mrb[2].mxu1 }
  0xfa   : > { %vm539_vm1 = vcmp.ge.f32.partialorder %v410_v5, 0.0  ;;  %v547_v12 = vmul.f32 0.2, %v410_v5  ;;  %v414_v15 = vpop.f32.mrb[3].mxu0  ;;  %vm541_vm2 = vcmp.ge.f32.partialorder %v451_v8, 0.0  ;;  %v455_v20 = vpop.f32.mrb[3].mxu1 }
  0xfb   : > { %v549_v16 = vmul.f32 0.2, %v451_v8  ;;  %vm540_vm3 = vcmp.ge.f32.partialorder %v412_v9, 0.0  ;;  %v548_v17 = vmul.f32 0.2, %v412_v9  ;;  %vm542_vm4 = vcmp.ge.f32.partialorder %v453_v13, 0.0 }
  0xfc   : > { %v555_v18 = vsel %vm539_vm1, %v410_v5, %v547_v12  ;;  %v550_v19 = vmul.f32 0.2, %v453_v13 }
  0xfd   : > { %563 = vst [vmem:[%s781_s25] sm:$0xff] %v555_v18  ;;  %v557_v21 = vsel %vm541_vm2, %v451_v8, %v549_v16  ;;  %v556_v22 = vsel %vm540_vm3, %v412_v9, %v548_v17 }
  0xfe   : > { %565 = vst [vmem:[%s781_s25 + $0x10] sm:$0xff] %v557_v21  ;;  %564 = vst [vmem:[%s781_s25 + $0x8] sm:$0xff] %v556_v22  ;;  %v558_v23 = vsel %vm542_vm4, %v453_v13, %v550_v19 }
  0xff   : > { %566 = vst [vmem:[%s781_s25 + $0x18] sm:$0xff] %v558_v23 }
 0x107   : > { %v491_v24 = vpop.f32.mrb[4].mxu0  ;;  %v532_v26 = vpop.f32.mrb[4].mxu1 }
 0x108   : > { %v492_v25 = vadd.f32 %v491_v24, %v209_v1  ;;  %v493_v27 = vpop.f32.mrb[5].mxu0  ;;  %v533_v28 = vadd.f32 %v532_v26, %v209_v1  ;;  %v534_v30 = vpop.f32.mrb[5].mxu1 }
 0x109   : > { %v494_v29 = vadd.f32 %v493_v27, %v209_v1  ;;  %v495_v31 = vpop.f32.mrb[6].mxu0  ;;  %v535_v33 = vadd.f32 %v534_v30, %v209_v1  ;;  %v536_v34 = vpop.f32.mrb[6].mxu1 }
 0x10a   : > { %vm543_vm5 = vcmp.ge.f32.partialorder %v492_v25, 0.0  ;;  %v551_v32 = vmul.f32 0.2, %v492_v25  ;;  %v496_v35 = vpop.f32.mrb[7].mxu0  ;;  %vm545_vm6 = vcmp.ge.f32.partialorder %v533_v28, 0.0  ;;  %v537_v40 = vpop.f32.mrb[7].mxu1 }
 0x10b   : > { %v553_v36 = vmul.f32 0.2, %v533_v28  ;;  %vm544_vm7 = vcmp.ge.f32.partialorder %v494_v29, 0.0  ;;  %v552_v37 = vmul.f32 0.2, %v494_v29  ;;  %vm546_vm8 = vcmp.ge.f32.partialorder %v535_v33, 0.0 }
 0x10c   : > { %v559_v38 = vsel %vm543_vm5, %v492_v25, %v551_v32  ;;  %v554_v39 = vmul.f32 0.2, %v535_v33 }
 0x10d   : > { %567 = vst [vmem:[%s781_s25 + $0x20] sm:$0xff] %v559_v38  ;;  %v561_v41 = vsel %vm545_vm6, %v533_v28, %v553_v36  ;;  %v560_v42 = vsel %vm544_vm7, %v494_v29, %v552_v37 }
 0x10e   : > { %569 = vst [vmem:[%s781_s25 + $0x30] sm:$0xff] %v561_v41  ;;  %568 = vst [vmem:[%s781_s25 + $0x28] sm:$0xff] %v560_v42  ;;  %v562_v43 = vsel %vm546_vm8, %v535_v33, %v554_v39 }
 0x10f   : > { %570 = vst [vmem:[%s781_s25 + $0x38] sm:$0xff] %v562_v43 }
 0x110 PF: > { %s13_s12 = sadd.s32 1, %s691_s12  }
 0x111   : > { %p10_p4 = scmp.ge.s32.totalorder %s13_s12, 4  }
 0x113   :  { %12 = sbr.rel (!%p10_p4) target bundleno = 1 (0x1), region = 62 }

</bundles_post_ra>
